<compile_context>
chip_gen: v6e
topology: v6e:2x2x1
jax: 0.10.0
libtpu: 0.0.40
codegen_flags: <defaults>
</compile_context>

<pallas_src>
import jax
import jax.numpy as jnp
from jax.experimental import pallas as pl
from jax.experimental.pallas import tpu as pltpu

# ----- small, deterministic config (mirrors Model.__init__) -----
SEQ_DAY, CYCLE, PRED_DAY = 4, 2, 2
NUM_NODE, NODE_FEATURE_DIM = 2, 2
D_MODEL = 32

SEQ_LEN = SEQ_DAY * CYCLE                                    # 8
PRED_LEN = PRED_DAY * CYCLE                                   # 4
ENC_IN = NODE_FEATURE_DIM * NUM_NODE + NUM_NODE * NUM_NODE    # 8
SEG_LEN = 48 if SEQ_LEN == 720 else (12 if SEQ_LEN == 168 else 1)
assert SEQ_LEN % SEG_LEN == 0 and PRED_LEN % SEG_LEN == 0
SEG_NUM_X = SEQ_LEN // SEG_LEN                                # 8
SEG_NUM_Y = PRED_LEN // SEG_LEN                               # 4
BATCH = 2
N_ROWS = BATCH * ENC_IN                                       # 16

# This kernel specializes the seg_len == 1 path of this config.
assert SEG_LEN == 1


def segrnn_kernel(xin_ref, wstack_ref, small_ref, y_ref):
    """SegRNN encoder + recursive (rmf) decoder for all N = batch*enc_in rows,
    single invocation (no grid), all operands resident in VMEM."""
    D = D_MODEL
    N = y_ref.shape[0]
    LN = SEG_NUM_X * N

    xin = xin_ref[...].astype(jnp.float32)        # (LN + N, 1)
    wstack = wstack_ref[...]                      # (2D, D+1)
    small = small_ref[...]                        # (4, D)

    xcol = xin[:LN, :]                            # (LN, 1) centered, t-major: row = t*N + n
    seq_last = xin[LN:, :]                        # (N, 1)  last value per (batch, channel) row

    wih = wstack[:D, :D]                          # (D, D)      == W_ih^T
    whh_pred = wstack[D:, :]                      # (D, D+1):   [:, :D] = W_hh^T, [:, D] = W_pred col

    wemb = small[0:1, :]                          # (1, D)  ValueEmbedding weight (seg_len==1 row)
    bemb = small[1:2, :]                          # (1, D)
    b_cell = small[2:3, :]                        # (1, D)  == b_ih + b_hh (folded)
    bpred = small[3:4, 0:1]                       # (1, 1)

    # ---- encoder: all input-side projections hoisted out of the recurrence ----
    # ValueEmbedding (Linear(1, D) + ReLU) for every segment of every row in one op,
    # then one (LN, D) @ (D, D) MXU matmul for the W_ih projection.
    e_all = jnp.maximum(xcol * wemb + bemb, 0.0)                       # (LN, D)
    a_all = jnp.dot(e_all, wih, preferred_element_type=jnp.float32) + b_cell

    # Serial recurrence carries only h @ W_hh + tanh; h0 == 0 so step 0 is just tanh.
    h = jnp.tanh(a_all[:N, :])
    for t in range(1, SEG_NUM_X):
        hw = jnp.dot(h, whh_pred, preferred_element_type=jnp.float32)  # (N, D+1)
        h = jnp.tanh(a_all[t * N:(t + 1) * N, :] + hw[:, :D])

    # ---- decoder: recursive multi-step forecasting (rmf), fully unrolled ----
    # TODO(synk): nn.Dropout inside `predict` is identity (eval-mode semantics).
    ys = []
    for i in range(SEG_NUM_Y):
        hw = jnp.dot(h, whh_pred, preferred_element_type=jnp.float32)  # (N, D+1)
        yy = hw[:, D:D + 1] + bpred                                     # (N, 1) == h @ Wpred + bpred
        ys.append(yy)
        if i + 1 < SEG_NUM_Y:        # final hidden-state update is unused by outputs
            e = jnp.maximum(yy * wemb + bemb, 0.0)                      # (N, D)
            a = jnp.dot(e, wih, preferred_element_type=jnp.float32) + b_cell
            h = jnp.tanh(a + hw[:, :D])

    # Fold "+ seq_last" here; single lane-dense store.
    y = jnp.concatenate(ys, axis=1) + seq_last                          # (N, PRED_LEN)
    y_ref[...] = y.astype(y_ref.dtype)


def _pack_params(params):
    """Pack the 8 tiny parameter tensors into 2 VMEM operands."""
    wemb, bemb, wih, bih, whh, bhh, wpred, bpred = params
    wstack = jnp.zeros((2 * D_MODEL, D_MODEL + 1), jnp.float32)
    wstack = wstack.at[:D_MODEL, :D_MODEL].set(wih)
    wstack = wstack.at[D_MODEL:, :D_MODEL].set(whh)
    wstack = wstack.at[D_MODEL:, D_MODEL:].set(wpred)                   # (D, 1) column
    small = jnp.concatenate(
        [wemb,                                                          # (1, D)
         bemb,                                                          # (1, D)
         bih + bhh,                                                     # (1, D) folded cell bias
         jnp.pad(bpred, ((0, 0), (0, D_MODEL - SEG_LEN)))],             # (1, D)
        axis=0)                                                         # (4, D)
    return wstack, small


@jax.jit
def segrnn_forward(x, params):
    """x: (batch, seq_len, enc_in) -> (batch, pred_len, enc_in)"""
    B, L, C = x.shape
    N = B * C

    wstack, small = _pack_params(params)

    seq_last = x[:, -1:, :]                                             # (B, 1, C)
    # t-major centered column: xcol[t*N + n, 0] = x[b, t, c] - x[b, L-1, c], n = b*C + c.
    xcol = jnp.transpose(x - seq_last, (1, 0, 2)).reshape(L * N, 1)
    # Append seq_last rows so the kernel gets a single data operand (one DMA).
    xin = jnp.concatenate([xcol, seq_last.reshape(N, 1)], axis=0)       # (L*N + N, 1)

    y_flat = pl.pallas_call(
        segrnn_kernel,
        out_shape=jax.ShapeDtypeStruct((N, PRED_LEN), x.dtype),
        in_specs=[
            pl.BlockSpec(memory_space=pltpu.MemorySpace.VMEM),
            pl.BlockSpec(memory_space=pltpu.MemorySpace.VMEM),
            pl.BlockSpec(memory_space=pltpu.MemorySpace.VMEM),
        ],
        out_specs=pl.BlockSpec(memory_space=pltpu.MemorySpace.VMEM),
    )(xin, wstack, small)

    y = y_flat.reshape(B, C, PRED_LEN)                                  # (B, enc_in, pred_len)
    return jnp.transpose(y, (0, 2, 1))                                  # (B, pred_len, enc_in)


def segrnn_reference(x, params):
    """Pure-JAX reference of the same forward pass (correctness check)."""
    wemb, bemb, wih, bih, whh, bhh, wpred, bpred = params
    B, L, C = x.shape
    seq_last = x[:, -1:, :]
    xn = jnp.transpose(x - seq_last, (0, 2, 1)).reshape(B * C, SEG_NUM_X, SEG_LEN)
    h = jnp.zeros((B * C, D_MODEL), jnp.float32)
    for t in range(SEG_NUM_X):
        e = jnp.maximum(xn[:, t, :] @ wemb + bemb, 0.0)
        h = jnp.tanh(e @ wih + bih + h @ whh + bhh)
    ys = []
    for _ in range(SEG_NUM_Y):
        yy = h @ wpred + bpred
        ys.append(yy)
        e = jnp.maximum(yy @ wemb + bemb, 0.0)
        h = jnp.tanh(e @ wih + bih + h @ whh + bhh)
    y = jnp.concatenate(ys, axis=1).reshape(B, C, PRED_LEN)
    return jnp.transpose(y, (0, 2, 1)) + seq_last


def init_params(key):
    ks = jax.random.split(key, 8)
    s = 0.1
    wemb = s * jax.random.normal(ks[0], (SEG_LEN, D_MODEL), jnp.float32)
    bemb = s * jax.random.normal(ks[1], (1, D_MODEL), jnp.float32)
    wih = s * jax.random.normal(ks[2], (D_MODEL, D_MODEL), jnp.float32)
    bih = s * jax.random.normal(ks[3], (1, D_MODEL), jnp.float32)
    whh = s * jax.random.normal(ks[4], (D_MODEL, D_MODEL), jnp.float32)
    bhh = s * jax.random.normal(ks[5], (1, D_MODEL), jnp.float32)
    wpred = s * jax.random.normal(ks[6], (D_MODEL, SEG_LEN), jnp.float32)
    bpred = s * jax.random.normal(ks[7], (1, SEG_LEN), jnp.float32)
    return (wemb, bemb, wih, bih, whh, bhh, wpred, bpred)


if __name__ == "__main__":
    key = jax.random.PRNGKey(0)
    kx, kp = jax.random.split(key)
    x = jax.random.normal(kx, (BATCH, SEQ_LEN, ENC_IN), jnp.float32)
    params = init_params(kp)

    y = segrnn_forward(x, params)
    y = jax.block_until_ready(y)

    y_ref = segrnn_reference(x, params)
    assert y.shape == (BATCH, PRED_LEN, ENC_IN)
    assert jnp.allclose(y, y_ref, atol=1e-5, rtol=1e-5), "mismatch vs reference"

    print("KERNEL_OK")
</pallas_src>

<mosaic_0001>
module attributes {stable_mosaic.version = 11 : i64} {
  func.func @segrnn_kernel(%arg0: memref<144x1xf32, #tpu.memory_space<vmem>>, %arg1: memref<64x33xf32, #tpu.memory_space<vmem>>, %arg2: memref<4x32xf32, #tpu.memory_space<vmem>>, %arg3: memref<16x4xf32, #tpu.memory_space<vmem>>) attributes {dimension_semantics = [], scalar_prefetch = 0 : i64, scratch_operands = 0 : i64, tpu.core_type = #tpu.core_type<tc>} {
    %c0 = arith.constant 0 : index
    %c0_0 = arith.constant 0 : index
    %0 = vector.load %arg0[%c0, %c0_0] : memref<144x1xf32, #tpu.memory_space<vmem>>, vector<144x1xf32>
    %c0_1 = arith.constant 0 : index
    %c0_2 = arith.constant 0 : index
    %1 = vector.load %arg1[%c0_1, %c0_2] : memref<64x33xf32, #tpu.memory_space<vmem>>, vector<64x33xf32>
    %c0_3 = arith.constant 0 : index
    %c0_4 = arith.constant 0 : index
    %2 = vector.load %arg2[%c0_3, %c0_4] : memref<4x32xf32, #tpu.memory_space<vmem>>, vector<4x32xf32>
    %3 = vector.extract_strided_slice %0 {offsets = [0, 0], sizes = [128, 1], strides = [1, 1]} : vector<144x1xf32> to vector<128x1xf32>
    %4 = vector.extract_strided_slice %0 {offsets = [128, 0], sizes = [16, 1], strides = [1, 1]} : vector<144x1xf32> to vector<16x1xf32>
    %5 = vector.extract_strided_slice %1 {offsets = [0, 0], sizes = [32, 32], strides = [1, 1]} : vector<64x33xf32> to vector<32x32xf32>
    %6 = vector.extract_strided_slice %1 {offsets = [32, 0], sizes = [32, 33], strides = [1, 1]} : vector<64x33xf32> to vector<32x33xf32>
    %7 = vector.extract_strided_slice %2 {offsets = [0, 0], sizes = [1, 32], strides = [1, 1]} : vector<4x32xf32> to vector<1x32xf32>
    %8 = vector.extract_strided_slice %2 {offsets = [1, 0], sizes = [1, 32], strides = [1, 1]} : vector<4x32xf32> to vector<1x32xf32>
    %9 = vector.extract_strided_slice %2 {offsets = [2, 0], sizes = [1, 32], strides = [1, 1]} : vector<4x32xf32> to vector<1x32xf32>
    %10 = vector.extract_strided_slice %2 {offsets = [3, 0], sizes = [1, 1], strides = [1, 1]} : vector<4x32xf32> to vector<1x1xf32>
    %11 = vector.broadcast %3 : vector<128x1xf32> to vector<128x32xf32>
    %12 = vector.broadcast %7 : vector<1x32xf32> to vector<128x32xf32>
    %13 = arith.mulf %11, %12 : vector<128x32xf32>
    %14 = vector.broadcast %8 : vector<1x32xf32> to vector<128x32xf32>
    %15 = arith.addf %13, %14 : vector<128x32xf32>
    %cst = arith.constant 0.000000e+00 : f32
    %16 = vector.broadcast %cst : f32 to vector<128x32xf32>
    %17 = arith.maximumf %15, %16 : vector<128x32xf32>
    %cst_5 = arith.constant dense<0.000000e+00> : vector<128x32xf32>
    %18 = tpu.matmul %17, %5, %cst_5 {dimension_numbers = #tpu.dot_dimension_numbers<[1], [0], [0], [1], [0, 0, 1, 1], [], []>} : vector<128x32xf32>, vector<32x32xf32>, vector<128x32xf32> -> vector<128x32xf32>
    %19 = vector.broadcast %9 : vector<1x32xf32> to vector<128x32xf32>
    %20 = arith.addf %18, %19 : vector<128x32xf32>
    %21 = vector.extract_strided_slice %20 {offsets = [0, 0], sizes = [16, 32], strides = [1, 1]} : vector<128x32xf32> to vector<16x32xf32>
    %22 = math.tanh %21 : vector<16x32xf32>
    %cst_6 = arith.constant dense<0.000000e+00> : vector<16x33xf32>
    %23 = tpu.matmul %22, %6, %cst_6 {dimension_numbers = #tpu.dot_dimension_numbers<[1], [0], [0], [1], [0, 0, 1, 1], [], []>} : vector<16x32xf32>, vector<32x33xf32>, vector<16x33xf32> -> vector<16x33xf32>
    %24 = vector.extract_strided_slice %20 {offsets = [16, 0], sizes = [16, 32], strides = [1, 1]} : vector<128x32xf32> to vector<16x32xf32>
    %25 = vector.extract_strided_slice %23 {offsets = [0, 0], sizes = [16, 32], strides = [1, 1]} : vector<16x33xf32> to vector<16x32xf32>
    %26 = arith.addf %24, %25 : vector<16x32xf32>
    %27 = math.tanh %26 : vector<16x32xf32>
    %cst_7 = arith.constant dense<0.000000e+00> : vector<16x33xf32>
    %28 = tpu.matmul %27, %6, %cst_7 {dimension_numbers = #tpu.dot_dimension_numbers<[1], [0], [0], [1], [0, 0, 1, 1], [], []>} : vector<16x32xf32>, vector<32x33xf32>, vector<16x33xf32> -> vector<16x33xf32>
    %29 = vector.extract_strided_slice %20 {offsets = [32, 0], sizes = [16, 32], strides = [1, 1]} : vector<128x32xf32> to vector<16x32xf32>
    %30 = vector.extract_strided_slice %28 {offsets = [0, 0], sizes = [16, 32], strides = [1, 1]} : vector<16x33xf32> to vector<16x32xf32>
    %31 = arith.addf %29, %30 : vector<16x32xf32>
    %32 = math.tanh %31 : vector<16x32xf32>
    %cst_8 = arith.constant dense<0.000000e+00> : vector<16x33xf32>
    %33 = tpu.matmul %32, %6, %cst_8 {dimension_numbers = #tpu.dot_dimension_numbers<[1], [0], [0], [1], [0, 0, 1, 1], [], []>} : vector<16x32xf32>, vector<32x33xf32>, vector<16x33xf32> -> vector<16x33xf32>
    %34 = vector.extract_strided_slice %20 {offsets = [48, 0], sizes = [16, 32], strides = [1, 1]} : vector<128x32xf32> to vector<16x32xf32>
    %35 = vector.extract_strided_slice %33 {offsets = [0, 0], sizes = [16, 32], strides = [1, 1]} : vector<16x33xf32> to vector<16x32xf32>
    %36 = arith.addf %34, %35 : vector<16x32xf32>
    %37 = math.tanh %36 : vector<16x32xf32>
    %cst_9 = arith.constant dense<0.000000e+00> : vector<16x33xf32>
    %38 = tpu.matmul %37, %6, %cst_9 {dimension_numbers = #tpu.dot_dimension_numbers<[1], [0], [0], [1], [0, 0, 1, 1], [], []>} : vector<16x32xf32>, vector<32x33xf32>, vector<16x33xf32> -> vector<16x33xf32>
    %39 = vector.extract_strided_slice %20 {offsets = [64, 0], sizes = [16, 32], strides = [1, 1]} : vector<128x32xf32> to vector<16x32xf32>
    %40 = vector.extract_strided_slice %38 {offsets = [0, 0], sizes = [16, 32], strides = [1, 1]} : vector<16x33xf32> to vector<16x32xf32>
    %41 = arith.addf %39, %40 : vector<16x32xf32>
    %42 = math.tanh %41 : vector<16x32xf32>
    %cst_10 = arith.constant dense<0.000000e+00> : vector<16x33xf32>
    %43 = tpu.matmul %42, %6, %cst_10 {dimension_numbers = #tpu.dot_dimension_numbers<[1], [0], [0], [1], [0, 0, 1, 1], [], []>} : vector<16x32xf32>, vector<32x33xf32>, vector<16x33xf32> -> vector<16x33xf32>
    %44 = vector.extract_strided_slice %20 {offsets = [80, 0], sizes = [16, 32], strides = [1, 1]} : vector<128x32xf32> to vector<16x32xf32>
    %45 = vector.extract_strided_slice %43 {offsets = [0, 0], sizes = [16, 32], strides = [1, 1]} : vector<16x33xf32> to vector<16x32xf32>
    %46 = arith.addf %44, %45 : vector<16x32xf32>
    %47 = math.tanh %46 : vector<16x32xf32>
    %cst_11 = arith.constant dense<0.000000e+00> : vector<16x33xf32>
    %48 = tpu.matmul %47, %6, %cst_11 {dimension_numbers = #tpu.dot_dimension_numbers<[1], [0], [0], [1], [0, 0, 1, 1], [], []>} : vector<16x32xf32>, vector<32x33xf32>, vector<16x33xf32> -> vector<16x33xf32>
    %49 = vector.extract_strided_slice %20 {offsets = [96, 0], sizes = [16, 32], strides = [1, 1]} : vector<128x32xf32> to vector<16x32xf32>
    %50 = vector.extract_strided_slice %48 {offsets = [0, 0], sizes = [16, 32], strides = [1, 1]} : vector<16x33xf32> to vector<16x32xf32>
    %51 = arith.addf %49, %50 : vector<16x32xf32>
    %52 = math.tanh %51 : vector<16x32xf32>
    %cst_12 = arith.constant dense<0.000000e+00> : vector<16x33xf32>
    %53 = tpu.matmul %52, %6, %cst_12 {dimension_numbers = #tpu.dot_dimension_numbers<[1], [0], [0], [1], [0, 0, 1, 1], [], []>} : vector<16x32xf32>, vector<32x33xf32>, vector<16x33xf32> -> vector<16x33xf32>
    %54 = vector.extract_strided_slice %20 {offsets = [112, 0], sizes = [16, 32], strides = [1, 1]} : vector<128x32xf32> to vector<16x32xf32>
    %55 = vector.extract_strided_slice %53 {offsets = [0, 0], sizes = [16, 32], strides = [1, 1]} : vector<16x33xf32> to vector<16x32xf32>
    %56 = arith.addf %54, %55 : vector<16x32xf32>
    %57 = math.tanh %56 : vector<16x32xf32>
    %cst_13 = arith.constant dense<0.000000e+00> : vector<16x33xf32>
    %58 = tpu.matmul %57, %6, %cst_13 {dimension_numbers = #tpu.dot_dimension_numbers<[1], [0], [0], [1], [0, 0, 1, 1], [], []>} : vector<16x32xf32>, vector<32x33xf32>, vector<16x33xf32> -> vector<16x33xf32>
    %59 = vector.extract_strided_slice %58 {offsets = [0, 32], sizes = [16, 1], strides = [1, 1]} : vector<16x33xf32> to vector<16x1xf32>
    %60 = vector.broadcast %10 : vector<1x1xf32> to vector<16x1xf32>
    %61 = arith.addf %59, %60 : vector<16x1xf32>
    %62 = vector.broadcast %61 : vector<16x1xf32> to vector<16x32xf32>
    %63 = vector.broadcast %7 : vector<1x32xf32> to vector<16x32xf32>
    %64 = arith.mulf %62, %63 : vector<16x32xf32>
    %65 = vector.broadcast %8 : vector<1x32xf32> to vector<16x32xf32>
    %66 = arith.addf %64, %65 : vector<16x32xf32>
    %cst_14 = arith.constant 0.000000e+00 : f32
    %67 = vector.broadcast %cst_14 : f32 to vector<16x32xf32>
    %68 = arith.maximumf %66, %67 : vector<16x32xf32>
    %cst_15 = arith.constant dense<0.000000e+00> : vector<16x32xf32>
    %69 = tpu.matmul %68, %5, %cst_15 {dimension_numbers = #tpu.dot_dimension_numbers<[1], [0], [0], [1], [0, 0, 1, 1], [], []>} : vector<16x32xf32>, vector<32x32xf32>, vector<16x32xf32> -> vector<16x32xf32>
    %70 = vector.broadcast %9 : vector<1x32xf32> to vector<16x32xf32>
    %71 = arith.addf %69, %70 : vector<16x32xf32>
    %72 = vector.extract_strided_slice %58 {offsets = [0, 0], sizes = [16, 32], strides = [1, 1]} : vector<16x33xf32> to vector<16x32xf32>
    %73 = arith.addf %71, %72 : vector<16x32xf32>
    %74 = math.tanh %73 : vector<16x32xf32>
    %cst_16 = arith.constant dense<0.000000e+00> : vector<16x33xf32>
    %75 = tpu.matmul %74, %6, %cst_16 {dimension_numbers = #tpu.dot_dimension_numbers<[1], [0], [0], [1], [0, 0, 1, 1], [], []>} : vector<16x32xf32>, vector<32x33xf32>, vector<16x33xf32> -> vector<16x33xf32>
    %76 = vector.extract_strided_slice %75 {offsets = [0, 32], sizes = [16, 1], strides = [1, 1]} : vector<16x33xf32> to vector<16x1xf32>
    %77 = vector.broadcast %10 : vector<1x1xf32> to vector<16x1xf32>
    %78 = arith.addf %76, %77 : vector<16x1xf32>
    %79 = vector.broadcast %78 : vector<16x1xf32> to vector<16x32xf32>
    %80 = vector.broadcast %7 : vector<1x32xf32> to vector<16x32xf32>
    %81 = arith.mulf %79, %80 : vector<16x32xf32>
    %82 = vector.broadcast %8 : vector<1x32xf32> to vector<16x32xf32>
    %83 = arith.addf %81, %82 : vector<16x32xf32>
    %cst_17 = arith.constant 0.000000e+00 : f32
    %84 = vector.broadcast %cst_17 : f32 to vector<16x32xf32>
    %85 = arith.maximumf %83, %84 : vector<16x32xf32>
    %cst_18 = arith.constant dense<0.000000e+00> : vector<16x32xf32>
    %86 = tpu.matmul %85, %5, %cst_18 {dimension_numbers = #tpu.dot_dimension_numbers<[1], [0], [0], [1], [0, 0, 1, 1], [], []>} : vector<16x32xf32>, vector<32x32xf32>, vector<16x32xf32> -> vector<16x32xf32>
    %87 = vector.broadcast %9 : vector<1x32xf32> to vector<16x32xf32>
    %88 = arith.addf %86, %87 : vector<16x32xf32>
    %89 = vector.extract_strided_slice %75 {offsets = [0, 0], sizes = [16, 32], strides = [1, 1]} : vector<16x33xf32> to vector<16x32xf32>
    %90 = arith.addf %88, %89 : vector<16x32xf32>
    %91 = math.tanh %90 : vector<16x32xf32>
    %cst_19 = arith.constant dense<0.000000e+00> : vector<16x33xf32>
    %92 = tpu.matmul %91, %6, %cst_19 {dimension_numbers = #tpu.dot_dimension_numbers<[1], [0], [0], [1], [0, 0, 1, 1], [], []>} : vector<16x32xf32>, vector<32x33xf32>, vector<16x33xf32> -> vector<16x33xf32>
    %93 = vector.extract_strided_slice %92 {offsets = [0, 32], sizes = [16, 1], strides = [1, 1]} : vector<16x33xf32> to vector<16x1xf32>
    %94 = vector.broadcast %10 : vector<1x1xf32> to vector<16x1xf32>
    %95 = arith.addf %93, %94 : vector<16x1xf32>
    %96 = vector.broadcast %95 : vector<16x1xf32> to vector<16x32xf32>
    %97 = vector.broadcast %7 : vector<1x32xf32> to vector<16x32xf32>
    %98 = arith.mulf %96, %97 : vector<16x32xf32>
    %99 = vector.broadcast %8 : vector<1x32xf32> to vector<16x32xf32>
    %100 = arith.addf %98, %99 : vector<16x32xf32>
    %cst_20 = arith.constant 0.000000e+00 : f32
    %101 = vector.broadcast %cst_20 : f32 to vector<16x32xf32>
    %102 = arith.maximumf %100, %101 : vector<16x32xf32>
    %cst_21 = arith.constant dense<0.000000e+00> : vector<16x32xf32>
    %103 = tpu.matmul %102, %5, %cst_21 {dimension_numbers = #tpu.dot_dimension_numbers<[1], [0], [0], [1], [0, 0, 1, 1], [], []>} : vector<16x32xf32>, vector<32x32xf32>, vector<16x32xf32> -> vector<16x32xf32>
    %104 = vector.broadcast %9 : vector<1x32xf32> to vector<16x32xf32>
    %105 = arith.addf %103, %104 : vector<16x32xf32>
    %106 = vector.extract_strided_slice %92 {offsets = [0, 0], sizes = [16, 32], strides = [1, 1]} : vector<16x33xf32> to vector<16x32xf32>
    %107 = arith.addf %105, %106 : vector<16x32xf32>
    %108 = math.tanh %107 : vector<16x32xf32>
    %cst_22 = arith.constant dense<0.000000e+00> : vector<16x33xf32>
    %109 = tpu.matmul %108, %6, %cst_22 {dimension_numbers = #tpu.dot_dimension_numbers<[1], [0], [0], [1], [0, 0, 1, 1], [], []>} : vector<16x32xf32>, vector<32x33xf32>, vector<16x33xf32> -> vector<16x33xf32>
    %110 = vector.extract_strided_slice %109 {offsets = [0, 32], sizes = [16, 1], strides = [1, 1]} : vector<16x33xf32> to vector<16x1xf32>
    %111 = vector.broadcast %10 : vector<1x1xf32> to vector<16x1xf32>
    %112 = arith.addf %110, %111 : vector<16x1xf32>
    %113 = tpu.concatenate %61, %78, %95, %112 in 1 : vector<16x1xf32>, vector<16x1xf32>, vector<16x1xf32>, vector<16x1xf32> -> vector<16x4xf32>
    %114 = vector.broadcast %4 : vector<16x1xf32> to vector<16x4xf32>
    %115 = arith.addf %113, %114 : vector<16x4xf32>
    %c0_23 = arith.constant 0 : index
    %c0_24 = arith.constant 0 : index
    %116 = vector.load %arg3[%c0_23, %c0_24] : memref<16x4xf32, #tpu.memory_space<vmem>>, vector<16x4xf32>
    tpu.vector_store %arg3[%c0_23, %c0_24], %115 {strides = array<i32>} : memref<16x4xf32, #tpu.memory_space<vmem>>, vector<16x4xf32>,
    return
  }
}

</mosaic_0001>

<bundles_post_ra>
// kernel: segrnn_forward.1
= control target key start
LH: loop header
LB: loop body
LE: loop exit
PB: predicated region body
PF: predicated region fallthrough
CT: control target
= control target key end

     0   :  { %v2060_v0 = vmov 0   ;;  %v121_v25 = vlaneseq  ;;  %vm181_vm0 = vcmask 261120   ;;  %s2063_s11 = smov 96   ;;  %s2064_s12 = smov 97   ;;  %vm1641_vm1 = vcmask 7168   ;;  %s2460_s0 = inlined_call_operand.vmem [shape: f32[144,1], index: 0, kind: input, shape index: {}]   ;;  %s2461_s1 = inlined_call_operand.vmem [shape: f32[64,33], index: 1, kind: input, shape index: {}]   ;;  %s2462_s2 = inlined_call_operand.vmem [shape: f32[4,32], index: 2, kind: input, shape index: {}]   ;;  %s2463_s3 = inlined_call_operand.vmem [shape: f32[16,4], index: 3, kind: output, shape index: {}]  }
   0x1   :  { %2010 = vset.pattern.permute.xlu0 %v2060_v0  ;;  %v14_v1 = vld [vmem:[%s2460_s0] sm:$0xff]  ;;  %2011 = vset.pattern.permute.xlu1 %v2060_v0  ;;  %v16_v2 = vld [vmem:[%s2460_s0 + $0x10] sm:$0xff]  ;;  %v15_v3 = vld [vmem:[%s2460_s0 + $0x8] sm:$0xff]  ;;  %s2065_s13 = smov 98   ;;  %vm1647_vm2 = vcmask 23552   ;;  %vm1644_vm3 = vcmask 15360  }
   0x2   :  { %43 = vperm.xlu0 %2010, %v14_v1   ;;  %53 = vperm.xlu1 %2011, %v16_v2   ;;  %v17_v4 = vld [vmem:[%s2460_s0 + $0x18] sm:$0xff]  ;;  %v18_v6 = vld [vmem:[%s2460_s0 + $0x20] sm:$0xff]  ;;  %v19_v7 = vld [vmem:[%s2460_s0 + $0x28] sm:$0xff]  ;;  %v2195_v26 = vshrl.u32 %v121_v25, 7  ;;  %vm1662_vm4 = vcmask 31744  }
   0x3   :  { %v2104_v5 = vld [vmem:[%s2461_s1 + $0x18] sm:$0xff]  ;;  %v2121_v9 = vld [vmem:[%s2461_s1 + $0x30] sm:$0xff]  ;;  %v2134_v11 = vld [vmem:[%s2461_s1 + $0x8] sm:$0xff] }
   0x4   :  { %v2115_v8 = vld [vmem:[%s2461_s1 + $0x38] sm:$0xff]  ;;  %1817 = vmatprep.subr.mxu0 %v2104_v5  ;;  %v2127_v10 = vld [vmem:[%s2461_s1 + $0x10] sm:$0xff]  ;;  %v2140_v12 = vld [vmem:[%s2461_s1 + $0x28] sm:$0xff]  ;;  %v123_v27 = vsub.s32 0, %v2195_v26  ;;  %v143_v29 = vsub.s32 1, %v2195_v26 }
   0x5   :  { %1818 = vmatpush3.msra.mxu0 %v2104_v5  ;;  %1849 = vmatprep.subr.mxu1 %v2115_v8  ;;  %v20_v13 = vld [vmem:[%s2460_s0 + $0x30] sm:$0xff]  ;;  %v21_v14 = vld [vmem:[%s2460_s0 + $0x38] sm:$0xff]  ;;  %v2154_v15 = vld [vmem:[%s2461_s1] sm:$0xff] }
   0x6   :  { %48 = vperm.xlu0 %2010, %v15_v3   ;;  %58 = vperm.xlu1 %2011, %v17_v4   ;;  %v2160_v16 = vld [vmem:[%s2461_s1 + $0x20] sm:$0xff]  ;;  %v23_v18 = vld [vmem:[%s2460_s0 + $0x48] sm:$0xff]  ;;  %v24_v19 = vld [vmem:[%s2460_s0 + $0x50] sm:$0xff] }
   0x7   :  { %1819 = vmatprep.subr.mxu0 %v2127_v10  ;;  %1850 = vmatpush3.msra.mxu1 %v2115_v8  ;;  %v22_v17 = vld [vmem:[%s2460_s0 + $0x40] sm:$0xff]  ;;  %v25_v20 = vld [vmem:[%s2460_s0 + $0x58] sm:$0xff]  ;;  %v27_v22 = vld [vmem:[%s2460_s0 + $0x68] sm:$0xff] }
   0x8   :  { %1820 = vmatpush3.msra.mxu0 %v2127_v10  ;;  %1851 = vmatprep.subr.mxu1 %v2121_v9  ;;  %v26_v21 = vld [vmem:[%s2460_s0 + $0x60] sm:$0xff]  ;;  %v28_v23 = vld [vmem:[%s2460_s0 + $0x70] sm:$0xff]  ;;  %v29_v24 = vld [vmem:[%s2460_s0 + $0x78] sm:$0xff] }
   0x9   :  { %1821 = vmatprep.subr.mxu0 %v2134_v11  ;;  %1852 = vmatpush3.msra.mxu1 %v2121_v9  ;;  %v2201_v28 = vld [vmem:[%s2462_s2] sm:$0xf]  ;;  %s2061_s2 = smov 32  }
   0xa   :  { %63 = vperm.xlu0 %2010, %v18_v6   ;;  %68 = vperm.xlu1 %2011, %v19_v7   ;;  %v2205_v30 = vrot.slane %v2201_v28, %v123_v27  ;;  %v2208_v31 = vrot.slane %v2201_v28, %v143_v29 }
   0xb   :  { %1822 = vmatpush3.msra.mxu0 %v2134_v11  ;;  %1853 = vmatprep.subr.mxu1 %v2140_v12 }
   0xc   :  { %1823 = vmatprep.subr.mxu0 %v2154_v15  ;;  %1854 = vmatpush3.msra.mxu1 %v2140_v12 }
   0xd   :  { %1824 = vmatpush3.msra.mxu0 %v2154_v15  ;;  %1855 = vmatprep.subr.mxu1 %v2160_v16 }
   0xe   :  { %73 = vperm.xlu0 %2010, %v20_v13   ;;  %78 = vperm.xlu1 %2011, %v21_v14  }
   0xf   :  { %1856 = vmatpush3.msra.mxu1 %v2160_v16  ;;  %1893 = vmatprep.subr.mxu0 %v2115_v8 }
  0x10   :  { %1860 = vmatprep.subr.mxu1 %v2115_v8 }
  0x12   :  { %83 = vperm.xlu0 %2010, %v22_v17   ;;  %88 = vperm.xlu1 %2011, %v23_v18  }
  0x16   :  { %93 = vperm.xlu0 %2010, %v24_v19   ;;  %98 = vperm.xlu1 %2011, %v25_v20  }
  0x1a   :  { %103 = vperm.xlu0 %2010, %v26_v21   ;;  %108 = vperm.xlu1 %2011, %v27_v22  }
  0x1e   :  { %113 = vperm.xlu0 %2010, %v28_v23   ;;  %118 = vperm.xlu1 %2011, %v29_v24  }
  0x7d   :  { %v44_v32 = vpop.permute.xlu0 %43  ;;  %v54_v33 = vpop.permute.xlu1 %53 }
  0x7e   :  { %v125_v34 = vmul.f32 %v2205_v30, %v44_v32  ;;  %v127_v35 = vmul.f32 %v2205_v30, %v54_v33 }
  0x80   :  { %v145_v36 = vadd.f32 %v2208_v31, %v125_v34  ;;  %v147_v37 = vadd.f32 %v2208_v31, %v127_v35 }
  0x81   :  { %v49_v38 = vpop.permute.xlu0 %48  ;;  %v59_v39 = vpop.permute.xlu1 %58 }
  0x82   :  { %v126_v40 = vmul.f32 %v2205_v30, %v49_v38  ;;  %v161_v41 = vmax.f32 %v145_v36, 0.0  ;;  %v128_v42 = vmul.f32 %v2205_v30, %v59_v39  ;;  %v163_v45 = vmax.f32 %v147_v37, 0.0 }
  0x84   :  { %v146_v43 = vadd.f32 %v2208_v31, %v126_v40  ;;  %1825 = vmatprep.mubr.msk.f32.mxu0 %vm181_vm0, %v161_v41  ;;  %v148_v44 = vadd.f32 %v2208_v31, %v128_v42 }
  0x85   :  { %v64_v46 = vpop.permute.xlu0 %63  ;;  %v69_v47 = vpop.permute.xlu1 %68 }
  0x86   :  { %v162_v48 = vmax.f32 %v146_v43, 0.0  ;;  %v129_v49 = vmul.f32 %v2205_v30, %v64_v46  ;;  %v130_v50 = vmul.f32 %v2205_v30, %v69_v47  ;;  %v164_v51 = vmax.f32 %v148_v44, 0.0 }
  0x88   :  { %v149_v52 = vadd.f32 %v2208_v31, %v129_v49  ;;  %1826 = vmatmul.mubr.msk.f32.vlgmr.msra.gmra.mxu0 %vm181_vm0, %v162_v48  ;;  %v150_v53 = vadd.f32 %v2208_v31, %v130_v50 }
  0x89   :  { %v74_v54 = vpop.permute.xlu0 %73  ;;  %1828 = vmatprep.mubr.msk.f32.mxu0 %vm181_vm0, %v163_v45  ;;  %v79_v55 = vpop.permute.xlu1 %78  ;;  %1894 = vmatpush3.msra.mxu0 %v2115_v8  ;;  %v179_v45 = vsub.s32 2, %v2195_v26 }
  0x8a   :  { %v165_v56 = vmax.f32 %v149_v52, 0.0  ;;  %v131_v57 = vmul.f32 %v2205_v30, %v74_v54  ;;  %v132_v58 = vmul.f32 %v2205_v30, %v79_v55  ;;  %1895 = vmatprep.subr.mxu0 %v2121_v9  ;;  %v166_v59 = vmax.f32 %v150_v53, 0.0 }
  0x8b   :  { %1896 = vmatpush3.msra.mxu0 %v2121_v9  ;;  %v2268_v46 = vrot.slane %v2201_v28, %v179_v45 }
  0x8c   :  { %v151_v60 = vadd.f32 %v2208_v31, %v131_v57  ;;  %1829 = vmatmul.mubr.msk.f32.gmra.mxu0 %vm181_vm0, %v164_v51  ;;  %v152_v61 = vadd.f32 %v2208_v31, %v132_v58  ;;  %1897 = vmatprep.subr.mxu0 %v2140_v12 }
  0x8d   :  { %1831 = vmatprep.mubr.msk.f32.mxu0 %vm181_vm0, %v165_v56  ;;  %v84_v62 = vpop.permute.xlu0 %83  ;;  %v89_v63 = vpop.permute.xlu1 %88  ;;  %1898 = vmatpush3.msra.mxu0 %v2140_v12 }
  0x8e   :  { %v167_v1 = vmax.f32 %v151_v60, 0.0  ;;  %v133_v2 = vmul.f32 %v2205_v30, %v84_v62  ;;  %v134_v3 = vmul.f32 %v2205_v30, %v89_v63  ;;  %1899 = vmatprep.subr.mxu0 %v2160_v16  ;;  %v168_v4 = vmax.f32 %v152_v61, 0.0 }
  0x8f   :  { %1900 = vmatpush3.msra.mxu0 %v2160_v16 }
  0x90   :  { %v153_v6 = vadd.f32 %v2208_v31, %v133_v2  ;;  %1832 = vmatmul.mubr.msk.f32.gmra.mxu0 %vm181_vm0, %v166_v59  ;;  %v154_v7 = vadd.f32 %v2208_v31, %v134_v3  ;;  %1915 = vmatprep.subr.mxu0 %v2115_v8 }
  0x91   :  { %1834 = vmatprep.mubr.msk.f32.mxu0 %vm181_vm0, %v167_v1  ;;  %v94_v13 = vpop.permute.xlu0 %93  ;;  %v99_v14 = vpop.permute.xlu1 %98 }
  0x92   :  { %v169_v17 = vmax.f32 %v153_v6, 0.0  ;;  %v135_v18 = vmul.f32 %v2205_v30, %v94_v13  ;;  %v136_v19 = vmul.f32 %v2205_v30, %v99_v14  ;;  %v170_v20 = vmax.f32 %v154_v7, 0.0 }
  0x94   :  { %v155_v21 = vadd.f32 %v2208_v31, %v135_v18  ;;  %1835 = vmatmul.mubr.msk.f32.gmra.mxu0 %vm181_vm0, %v168_v4  ;;  %v156_v22 = vadd.f32 %v2208_v31, %v136_v19 }
  0x95   :  { %1837 = vmatprep.mubr.msk.f32.mxu0 %vm181_vm0, %v169_v17  ;;  %v104_v23 = vpop.permute.xlu0 %103  ;;  %v109_v24 = vpop.permute.xlu1 %108 }
  0x96   :  { %v171_v25 = vmax.f32 %v155_v21, 0.0  ;;  %v137_v27 = vmul.f32 %v2205_v30, %v104_v23  ;;  %v138_v29 = vmul.f32 %v2205_v30, %v109_v24  ;;  %v172_v32 = vmax.f32 %v156_v22, 0.0 }
  0x98   :  { %v157_v33 = vadd.f32 %v2208_v31, %v137_v27  ;;  %1838 = vmatmul.mubr.msk.f32.gmra.mxu0 %vm181_vm0, %v170_v20  ;;  %v158_v34 = vadd.f32 %v2208_v31, %v138_v29 }
  0x99   :  { %1840 = vmatprep.mubr.msk.f32.mxu0 %vm181_vm0, %v171_v25  ;;  %v114_v35 = vpop.permute.xlu0 %113  ;;  %v119_v41 = vpop.permute.xlu1 %118 }
  0x9a   :  { %v173_v36 = vmax.f32 %v157_v33, 0.0  ;;  %v139_v37 = vmul.f32 %v2205_v30, %v114_v35  ;;  %v174_v38 = vmax.f32 %v158_v34, 0.0  ;;  %v140_v42 = vmul.f32 %v2205_v30, %v119_v41 }
  0x9c   :  { %v159_v39 = vadd.f32 %v2208_v31, %v139_v37  ;;  %1841 = vmatmul.mubr.msk.f32.gmra.mxu0 %vm181_vm0, %v172_v32  ;;  %v160_v43 = vadd.f32 %v2208_v31, %v140_v42 }
  0x9d   :  { %1843 = vmatprep.mubr.msk.f32.mxu0 %vm181_vm0, %v173_v36 }
  0x9e   :  { %v175_v40 = vmax.f32 %v159_v39, 0.0  ;;  %v176_v44 = vmax.f32 %v160_v43, 0.0 }
  0xa0   :  { %1844 = vmatmul.mubr.msk.f32.gmra.mxu0 %vm181_vm0, %v174_v38 }
  0xa1   :  { %1846 = vmatprep.mubr.msk.f32.mxu0 %vm181_vm0, %v175_v40 }
  0xa4   :  { %1847 = vmatmul.mubr.msk.f32.gmra.mxu0 %vm181_vm0, %v176_v44 }
 0x148   :  { %v1827_v47 = vpop.f32.mrf.mxu0 }
 0x149   :  { %v302_v48 = vadd.f32 %v1827_v47, %v2268_v46 }
 0x14a   :  { %v296_v49 = vpop.f32.mrf.mxu0 }
 0x14b   :  { %v297_v50 = vadd.f32 %v296_v49, %v2268_v46 }
 0x14c   :  { %v1830_v53 = vpop.f32.mrf.mxu0 }
 0x14d   :  { %2016 = vtanh.f32 %v297_v50  ;;  %v312_v54 = vadd.f32 %v1830_v53, %v2268_v46 }
 0x14e   :  { %2018 = vtanh.f32 %v302_v48  ;;  %v306_v55 = vpop.f32.mrf.mxu0 }
 0x14f   :  { %v307_v57 = vadd.f32 %v306_v55, %v2268_v46 }
 0x150   :  { %v1833_v63 = vpop.f32.mrf.mxu0 }
 0x151   :  { %v322_v1 = vadd.f32 %v1833_v63, %v2268_v46 }
 0x152   :  { %v316_v2 = vpop.f32.mrf.mxu0 }
 0x153   :  { %v317_v4 = vadd.f32 %v316_v2, %v2268_v46  ;;  %v1055_v2 = vsub.s32 3, %v2195_v26  ;;  %v2062_v26 = vmov 32  }
 0x154   :  { %v1836_v18 = vpop.f32.mrf.mxu0  ;;  %2013 = vset.pattern.permute.xlu0 %v2062_v26  ;;  %2012 = vset.pattern.permute.xlu1 %v2062_v26 }
 0x155   :  { %v332_v19 = vadd.f32 %v1836_v18, %v2268_v46 }
 0x156   :  { %v326_v20 = vpop.f32.mrf.mxu0 }
 0x157   :  { %v327_v22 = vadd.f32 %v326_v20, %v2268_v46 }
 0x158   :  { %v1839_v32 = vpop.f32.mrf.mxu0 }
 0x159   :  { %v342_v33 = vadd.f32 %v1839_v32, %v2268_v46 }
 0x15a   :  { %v2017_v51 = vpop.eup %2016  ;;  %v336_v34 = vpop.f32.mrf.mxu0 }
 0x15b   :  { %v2019_v52 = vpop.eup %2018  ;;  %1857 = vmatprep.mubr.msk.f32.mxu1 %vm181_vm0, %v2017_v51  ;;  %v337_v36 = vadd.f32 %v336_v34, %v2268_v46 }
 0x15c   :  { %1858 = vmatmul.mubr.msk.f32.vlgmr.msra.gmra.mxu1 %vm181_vm0, %v2019_v52  ;;  %v1842_v42 = vpop.f32.mrf.mxu0 }
 0x15d   :  { %1861 = vmatpush3.msra.mxu1 %v2115_v8  ;;  %v352_v49 = vadd.f32 %v1842_v42, %v2268_v46 }
 0x15e   :  { %1862 = vmatprep.subr.mxu1 %v2121_v9  ;;  %v346_v43 = vpop.f32.mrf.mxu0 }
 0x15f   :  { %1863 = vmatpush3.msra.mxu1 %v2121_v9  ;;  %v347_v51 = vadd.f32 %v346_v43, %v2268_v46 }
 0x160   :  { %1864 = vmatprep.subr.mxu1 %v2140_v12  ;;  %v1845_v44 = vpop.f32.mrf.mxu0 }
 0x161   :  { %1865 = vmatpush3.msra.mxu1 %v2140_v12 }
 0x162   :  { %1866 = vmatprep.subr.mxu1 %v2160_v16  ;;  %v356_v45 = vpop.f32.mrf.mxu0 }
 0x163   :  { %1867 = vmatpush3.msra.mxu1 %v2160_v16 }
 0x164   :  { %1871 = vmatprep.subr.mxu1 %v2115_v8  ;;  %v1848_v47 = vpop.f32.mrf.mxu0 }
 0x166   :  { %v366_v48 = vpop.f32.mrf.mxu0 }
 0x21c   :  { %v1859_v56 = vpop.f32.mrf.mxu1 }
 0x21d   :  { %v459_v58 = vadd.f32 %v1859_v56, %v312_v54 }
 0x21e   :  { %v449_v59 = vpop.f32.mrf.mxu1 }
 0x21f   :  { %v458_v60 = vadd.f32 %v449_v59, %v307_v57  ;;  %v362_v57 = vadd.f32 %v1845_v44, %v2268_v46  ;;  %v357_v59 = vadd.f32 %v356_v45, %v2268_v46 }
 0x221   :  { %2020 = vtanh.f32 %v458_v60 }
 0x222   :  { %2022 = vtanh.f32 %v459_v58 }
 0x22e   :  { %v2021_v61 = vpop.eup %2020 }
 0x22f   :  { %v2023_v62 = vpop.eup %2022  ;;  %1868 = vmatprep.mubr.msk.f32.mxu1 %vm181_vm0, %v2021_v61 }
 0x230   :  { %1869 = vmatmul.mubr.msk.f32.vlgmr.msra.gmra.mxu1 %vm181_vm0, %v2023_v62 }
 0x231   :  { %1872 = vmatpush3.msra.mxu1 %v2115_v8 }
 0x232   :  { %1873 = vmatprep.subr.mxu1 %v2121_v9 }
 0x233   :  { %1874 = vmatpush3.msra.mxu1 %v2121_v9 }
 0x234   :  { %1875 = vmatprep.subr.mxu1 %v2140_v12 }
 0x235   :  { %1876 = vmatpush3.msra.mxu1 %v2140_v12 }
 0x236   :  { %1877 = vmatprep.subr.mxu1 %v2160_v16 }
 0x237   :  { %1878 = vmatpush3.msra.mxu1 %v2160_v16 }
 0x238   :  { %1882 = vmatprep.subr.mxu1 %v2115_v8 }
 0x2f0   :  { %v1870_v3 = vpop.f32.mrf.mxu1 }
 0x2f1   :  { %v544_v6 = vadd.f32 %v1870_v3, %v322_v1  ;;  %v1056_v3 = vrot.slane %v2201_v28, %v1055_v2 }
 0x2f2   :  { %v534_v7 = vpop.f32.mrf.mxu1 }
 0x2f3   :  { %v543_v13 = vadd.f32 %v534_v7, %v317_v4  ;;  %1058 = vrot.lane.b32.xlu0 %v1056_v3, %s2061_s2  ;;  %v372_v4 = vadd.f32 %v1848_v47, %v2268_v46  ;;  %v367_v7 = vadd.f32 %v366_v48, %v2268_v46 }
 0x2f5   :  { %2024 = vtanh.f32 %v543_v13 }
 0x2f6   :  { %2026 = vtanh.f32 %v544_v6 }
 0x302   :  { %v2025_v14 = vpop.eup %2024 }
 0x303   :  { %v2027_v17 = vpop.eup %2026  ;;  %1879 = vmatprep.mubr.msk.f32.mxu1 %vm181_vm0, %v2025_v14 }
 0x304   :  { %1880 = vmatmul.mubr.msk.f32.vlgmr.msra.gmra.mxu1 %vm181_vm0, %v2027_v17 }
 0x305   :  { %1883 = vmatpush3.msra.mxu1 %v2115_v8 }
 0x306   :  { %1884 = vmatprep.subr.mxu1 %v2121_v9 }
 0x307   :  { %1885 = vmatpush3.msra.mxu1 %v2121_v9 }
 0x308   :  { %1886 = vmatprep.subr.mxu1 %v2140_v12 }
 0x309   :  { %1887 = vmatpush3.msra.mxu1 %v2140_v12 }
 0x30a   :  { %1888 = vmatprep.subr.mxu1 %v2160_v16 }
 0x30b   :  { %1889 = vmatpush3.msra.mxu1 %v2160_v16 }
 0x30c   :  { %1904 = vmatprep.subr.mxu1 %v2115_v8 }
 0x365   :  { %v2368_v28 = vpop.permute.xlu0 %1058 }
 0x3c4   :  { %v1881_v21 = vpop.f32.mrf.mxu1 }
 0x3c5   :  { %v629_v23 = vadd.f32 %v1881_v21, %v332_v19 }
 0x3c6   :  { %v619_v24 = vpop.f32.mrf.mxu1 }
 0x3c7   :  { %v628_v25 = vadd.f32 %v619_v24, %v327_v22 }
 0x3c9   :  { %2028 = vtanh.f32 %v628_v25 }
 0x3ca   :  { %2030 = vtanh.f32 %v629_v23 }
 0x3d6   :  { %v2029_v27 = vpop.eup %2028 }
 0x3d7   :  { %v2031_v29 = vpop.eup %2030  ;;  %1890 = vmatprep.mubr.msk.f32.mxu1 %vm181_vm0, %v2029_v27 }
 0x3d8   :  { %1891 = vmatmul.mubr.msk.f32.vlgmr.msra.gmra.mxu1 %vm181_vm0, %v2031_v29 }
 0x3d9   :  { %1905 = vmatpush3.msra.mxu1 %v2115_v8 }
 0x3da   :  { %1906 = vmatprep.subr.mxu1 %v2121_v9 }
 0x3db   :  { %1907 = vmatpush3.msra.mxu1 %v2121_v9 }
 0x3dc   :  { %1908 = vmatprep.subr.mxu1 %v2140_v12 }
 0x3dd   :  { %1909 = vmatpush3.msra.mxu1 %v2140_v12 }
 0x3de   :  { %1910 = vmatprep.subr.mxu1 %v2160_v16 }
 0x3df   :  { %1911 = vmatpush3.msra.mxu1 %v2160_v16 }
 0x3e0   :  { %1926 = vmatprep.subr.mxu1 %v2115_v8 }
 0x498   :  { %v1892_v35 = vpop.f32.mrf.mxu1 }
 0x499   :  { %v714_v37 = vadd.f32 %v1892_v35, %v342_v33 }
 0x49a   :  { %v704_v38 = vpop.f32.mrf.mxu1 }
 0x49b   :  { %v713_v39 = vadd.f32 %v704_v38, %v337_v36 }
 0x49d   :  { %2032 = vtanh.f32 %v713_v39 }
 0x49e   :  { %2034 = vtanh.f32 %v714_v37 }
 0x4aa   :  { %v2033_v40 = vpop.eup %2032 }
 0x4ab   :  { %v2035_v41 = vpop.eup %2034  ;;  %1901 = vmatprep.mubr.msk.f32.mxu0 %vm181_vm0, %v2033_v40 }
 0x4ac   :  { %1902 = vmatmul.mubr.msk.f32.vlgmr.msra.gmra.mxu0 %vm181_vm0, %v2035_v41 }
 0x4ad   :  { %1916 = vmatpush3.msra.mxu0 %v2115_v8 }
 0x4ae   :  { %1917 = vmatprep.subr.mxu0 %v2121_v9 }
 0x4af   :  { %1918 = vmatpush3.msra.mxu0 %v2121_v9 }
 0x4b0   :  { %1919 = vmatprep.subr.mxu0 %v2140_v12 }
 0x4b1   :  { %1920 = vmatpush3.msra.mxu0 %v2140_v12 }
 0x4b2   :  { %1921 = vmatprep.subr.mxu0 %v2160_v16 }
 0x4b3   :  { %1922 = vmatpush3.msra.mxu0 %v2160_v16 }
 0x4b4   :  { %1937 = vmatprep.subr.mxu0 %v2104_v5 }
 0x56c   :  { %v1903_v50 = vpop.f32.mrf.mxu0 }
 0x56d   :  { %v799_v52 = vadd.f32 %v1903_v50, %v352_v49 }
 0x56e   :  { %v789_v53 = vpop.f32.mrf.mxu0 }
 0x56f   :  { %v798_v54 = vadd.f32 %v789_v53, %v347_v51 }
 0x571   :  { %2036 = vtanh.f32 %v798_v54 }
 0x572   :  { %2038 = vtanh.f32 %v799_v52 }
 0x57e   :  { %v2037_v55 = vpop.eup %2036 }
 0x57f   :  { %v2039_v56 = vpop.eup %2038  ;;  %1912 = vmatprep.mubr.msk.f32.mxu1 %vm181_vm0, %v2037_v55 }
 0x580   :  { %1913 = vmatmul.mubr.msk.f32.vlgmr.msra.gmra.mxu1 %vm181_vm0, %v2039_v56 }
 0x581   :  { %1927 = vmatpush3.msra.mxu1 %v2115_v8 }
 0x582   :  { %1928 = vmatprep.subr.mxu1 %v2121_v9 }
 0x583   :  { %1929 = vmatpush3.msra.mxu1 %v2121_v9 }
 0x584   :  { %1930 = vmatprep.subr.mxu1 %v2140_v12 }
 0x585   :  { %1931 = vmatpush3.msra.mxu1 %v2140_v12 }
 0x586   :  { %1932 = vmatprep.subr.mxu1 %v2160_v16 }
 0x587   :  { %1933 = vmatpush3.msra.mxu1 %v2160_v16 }
 0x588   :  { %1948 = vmatprep.subr.mxu1 %v2115_v8 }
 0x640   :  { %v1914_v58 = vpop.f32.mrf.mxu1 }
 0x641   :  { %v884_v60 = vadd.f32 %v1914_v58, %v362_v57 }
 0x642   :  { %v874_v61 = vpop.f32.mrf.mxu1 }
 0x643   :  { %v883_v62 = vadd.f32 %v874_v61, %v357_v59 }
 0x645   :  { %2040 = vtanh.f32 %v883_v62 }
 0x646   :  { %2042 = vtanh.f32 %v884_v60 }
 0x652   :  { %v2041_v63 = vpop.eup %2040 }
 0x653   :  { %v2043_v1 = vpop.eup %2042  ;;  %1923 = vmatprep.mubr.msk.f32.mxu0 %vm181_vm0, %v2041_v63 }
 0x654   :  { %1924 = vmatmul.mubr.msk.f32.vlgmr.msra.gmra.mxu0 %vm181_vm0, %v2043_v1 }
 0x655   :  { %1938 = vmatpush3.msra.mxu0 %v2104_v5 }
 0x656   :  { %1939 = vmatprep.subr.mxu0 %v2127_v10 }
 0x657   :  { %1940 = vmatpush3.msra.mxu0 %v2127_v10 }
 0x658   :  { %1941 = vmatprep.subr.mxu0 %v2134_v11 }
 0x659   :  { %1942 = vmatpush3.msra.mxu0 %v2134_v11 }
 0x65a   :  { %1943 = vmatprep.subr.mxu0 %v2154_v15 }
 0x65b   :  { %1944 = vmatpush3.msra.mxu0 %v2154_v15 }
 0x65c   :  { %1959 = vmatprep.subr.mxu0 %v2104_v5 }
 0x714   :  { %v1925_v6 = vpop.f32.mrf.mxu0 }
 0x715   :  { %v969_v13 = vadd.f32 %v1925_v6, %v372_v4 }
 0x716   :  { %v959_v14 = vpop.f32.mrf.mxu0 }
 0x717   :  { %v968_v17 = vadd.f32 %v959_v14, %v367_v7 }
 0x719   :  { %2044 = vtanh.f32 %v968_v17 }
 0x71a   :  { %2046 = vtanh.f32 %v969_v13 }
 0x726   :  { %v2045_v18 = vpop.eup %2044 }
 0x727   :  { %v2047_v19 = vpop.eup %2046  ;;  %1934 = vmatprep.mubr.msk.f32.mxu1 %vm181_vm0, %v2045_v18 }
 0x728   :  { %1935 = vmatmul.mubr.msk.f32.vlgmr.msra.gmra.mxu1 %vm181_vm0, %v2047_v19 }
 0x729   :  { %1949 = vmatpush3.msra.mxu1 %v2115_v8 }
 0x72a   :  { %1950 = vmatprep.subr.mxu1 %v2121_v9 }
 0x72b   :  { %1951 = vmatpush3.msra.mxu1 %v2121_v9 }
 0x72c   :  { %1952 = vmatprep.subr.mxu1 %v2140_v12 }
 0x72d   :  { %1953 = vmatpush3.msra.mxu1 %v2140_v12 }
 0x72e   :  { %1954 = vmatprep.subr.mxu1 %v2160_v16 }
 0x72f   :  { %1955 = vmatpush3.msra.mxu1 %v2160_v16 }
 0x730   :  { %1970 = vmatprep.subr.mxu1 %v2115_v8 }
 0x7e8   :  { %v1936_v20 = vpop.f32.mrf.mxu1 }
 0x7e9   :  { %v2371_v21 = vadd.f32 %v1936_v20, %v2368_v28 }
 0x7ea   :  { %v1044_v22 = vpop.f32.mrf.mxu1 }
 0x7eb   :  { %v2374_v23 = vadd.f32 %v2368_v28, %v1044_v22  ;;  %1070 = vperm.xlu0 %2013, %v2371_v21  }
 0x7ed   :  { %1065 = vperm.xlu1 %2012, %v2374_v23  }
 0x866   :  { %v1071_v24 = vpop.permute.xlu0 %1070 }
 0x867   :  { %v1074_v25 = vmul.f32 %v1071_v24, %v2205_v30 }
 0x868   :  { %v1066_v27 = vpop.permute.xlu1 %1065 }
 0x869   :  { %v1073_v29 = vmul.f32 %v1066_v27, %v2205_v30  ;;  %v1076_v32 = vadd.f32 %v1074_v25, %v2208_v31 }
 0x86b   :  { %v1075_v33 = vadd.f32 %v1073_v29, %v2208_v31  ;;  %v1078_v35 = vmax.f32 %v1076_v32, 0.0 }
 0x86d   :  { %v1077_v34 = vmax.f32 %v1075_v33, 0.0 }
 0x86f   :  { %1945 = vmatprep.mubr.msk.f32.mxu0 %vm181_vm0, %v1077_v34 }
 0x870   :  { %1946 = vmatmul.mubr.msk.f32.vlgmr.msra.gmra.mxu0 %vm181_vm0, %v1078_v35 }
 0x871   :  { %1960 = vmatpush3.msra.mxu0 %v2104_v5 }
 0x872   :  { %1961 = vmatprep.subr.mxu0 %v2127_v10 }
 0x873   :  { %1962 = vmatpush3.msra.mxu0 %v2127_v10 }
 0x874   :  { %1963 = vmatprep.subr.mxu0 %v2134_v11 }
 0x875   :  { %1964 = vmatpush3.msra.mxu0 %v2134_v11 }
 0x876   :  { %1965 = vmatprep.subr.mxu0 %v2154_v15 }
 0x877   :  { %1966 = vmatpush3.msra.mxu0 %v2154_v15 }
 0x878   :  { %1981 = vmatprep.subr.mxu0 %v2104_v5 }
 0x930   :  { %v1947_v36 = vpop.f32.mrf.mxu0 }
 0x931   :  { %v1157_v37 = vadd.f32 %v1947_v36, %v2268_v46 }
 0x932   :  { %v1151_v38 = vpop.f32.mrf.mxu0 }
 0x933   :  { %v1152_v39 = vadd.f32 %v1151_v38, %v2268_v46  ;;  %v1161_v40 = vadd.f32 %v1936_v20, %v1157_v37 }
 0x935   :  { %v1160_v41 = vadd.f32 %v1152_v39, %v1044_v22 }
 0x937   :  { %2048 = vtanh.f32 %v1160_v41 }
 0x938   :  { %2050 = vtanh.f32 %v1161_v40 }
 0x944   :  { %v2049_v42 = vpop.eup %2048 }
 0x945   :  { %v2051_v43 = vpop.eup %2050  ;;  %1956 = vmatprep.mubr.msk.f32.mxu1 %vm181_vm0, %v2049_v42 }
 0x946   :  { %1957 = vmatmul.mubr.msk.f32.vlgmr.msra.gmra.mxu1 %vm181_vm0, %v2051_v43 }
 0x947   :  { %1971 = vmatpush3.msra.mxu1 %v2115_v8 }
 0x948   :  { %1972 = vmatprep.subr.mxu1 %v2121_v9 }
 0x949   :  { %1973 = vmatpush3.msra.mxu1 %v2121_v9 }
 0x94a   :  { %1974 = vmatprep.subr.mxu1 %v2140_v12 }
 0x94b   :  { %1975 = vmatpush3.msra.mxu1 %v2140_v12 }
 0x94c   :  { %1976 = vmatprep.subr.mxu1 %v2160_v16 }
 0x94d   :  { %1977 = vmatpush3.msra.mxu1 %v2160_v16 }
 0x94e   :  { %1992 = vmatprep.subr.mxu1 %v2115_v8 }
 0xa06   :  { %v1958_v44 = vpop.f32.mrf.mxu1 }
 0xa07   :  { %v1246_v48 = vadd.f32 %v1958_v44, %v2368_v28 }
 0xa08   :  { %v1236_v45 = vpop.f32.mrf.mxu1 }
 0xa09   :  { %v1245_v47 = vadd.f32 %v1236_v45, %v2368_v28 }
 0xa0b   :  { %1249 = vperm.xlu1 %2012, %v1245_v47  }
 0xa0f   :  { %1254 = vperm.xlu1 %2012, %v1246_v48  }
 0xa86   :  { %v1250_v49 = vpop.permute.xlu1 %1249 }
 0xa87   :  { %v1257_v50 = vmul.f32 %v1250_v49, %v2205_v30 }
 0xa89   :  { %v1259_v51 = vadd.f32 %v1257_v50, %v2208_v31 }
 0xa8a   :  { %v1255_v52 = vpop.permute.xlu1 %1254 }
 0xa8b   :  { %v1261_v53 = vmax.f32 %v1259_v51, 0.0  ;;  %v1258_v54 = vmul.f32 %v1255_v52, %v2205_v30 }
 0xa8d   :  { %v1260_v55 = vadd.f32 %v1258_v54, %v2208_v31  ;;  %1967 = vmatprep.mubr.msk.f32.mxu0 %vm181_vm0, %v1261_v53 }
 0xa8f   :  { %v1262_v56 = vmax.f32 %v1260_v55, 0.0 }
 0xa91   :  { %1968 = vmatmul.mubr.msk.f32.vlgmr.msra.gmra.mxu0 %vm181_vm0, %v1262_v56 }
 0xa92   :  { %1982 = vmatpush3.msra.mxu0 %v2104_v5 }
 0xa93   :  { %1983 = vmatprep.subr.mxu0 %v2127_v10 }
 0xa94   :  { %1984 = vmatpush3.msra.mxu0 %v2127_v10 }
 0xa95   :  { %1985 = vmatprep.subr.mxu0 %v2134_v11 }
 0xa96   :  { %1986 = vmatpush3.msra.mxu0 %v2134_v11 }
 0xa97   :  { %1987 = vmatprep.subr.mxu0 %v2154_v15 }
 0xa98   :  { %1988 = vmatpush3.msra.mxu0 %v2154_v15 }
 0xb51   :  { %v1969_v57 = vpop.f32.mrf.mxu0 }
 0xb52   :  { %v1341_v58 = vadd.f32 %v1969_v57, %v2268_v46 }
 0xb53   :  { %v1335_v59 = vpop.f32.mrf.mxu0 }
 0xb54   :  { %v1336_v60 = vadd.f32 %v1335_v59, %v2268_v46  ;;  %v1345_v61 = vadd.f32 %v1958_v44, %v1341_v58 }
 0xb56   :  { %v1344_v5 = vadd.f32 %v1336_v60, %v1236_v45 }
 0xb58   :  { %2052 = vtanh.f32 %v1344_v5 }
 0xb59   :  { %2054 = vtanh.f32 %v1345_v61 }
 0xb65   :  { %v2053_v62 = vpop.eup %2052 }
 0xb66   :  { %v2055_v10 = vpop.eup %2054  ;;  %1978 = vmatprep.mubr.msk.f32.mxu1 %vm181_vm0, %v2053_v62 }
 0xb67   :  { %1979 = vmatmul.mubr.msk.f32.vlgmr.msra.gmra.mxu1 %vm181_vm0, %v2055_v10 }
 0xb68   :  { %1993 = vmatpush3.msra.mxu1 %v2115_v8  ;;  %v31_v8 = vld [vmem:[%s2460_s0 + $0x88] sm:$0xff] }
 0xb69   :  { %1994 = vmatprep.subr.mxu1 %v2121_v9 }
 0xb6a   :  { %1995 = vmatpush3.msra.mxu1 %v2121_v9  ;;  %v30_v9 = vld [vmem:[%s2460_s0 + $0x80] sm:$0xff]  ;;  %s2066_s0 = smov 99  }
 0xb6b   :  { %1996 = vmatprep.subr.mxu1 %v2140_v12 }
 0xb6c   :  { %1997 = vmatpush3.msra.mxu1 %v2140_v12 }
 0xb6d   :  { %1998 = vmatprep.subr.mxu1 %v2160_v16 }
 0xb6e   :  { %1999 = vmatpush3.msra.mxu1 %v2160_v16 }
 0xc27   :  { %v1980_v11 = vpop.f32.mrf.mxu1 }
 0xc28   :  { %v1430_v15 = vadd.f32 %v1980_v11, %v2368_v28 }
 0xc29   :  { %v1420_v63 = vpop.f32.mrf.mxu1 }
 0xc2a   :  { %v1429_v1 = vadd.f32 %v1420_v63, %v2368_v28  ;;  %1438 = vperm.xlu1 %2012, %v1430_v15  }
 0xc2c   :  { %1433 = vperm.xlu0 %2013, %v1429_v1  }
 0xc2e   :  { %2015 = vset.pattern.permute.xlu1 %v2060_v0 }
 0xc2f   :  { %1657 = vperm.xlu1 %2015, %v31_v8  }
 0xc30   :  { %2014 = vset.pattern.permute.xlu0 %v2060_v0 }
 0xc31   :  { %1652 = vperm.xlu0 %2014, %v30_v9  }
 0xc33   :  { %1615 = vrot.lane.b32.xlu1 %v2374_v23, %s2063_s11 }
 0xc35   :  { %1617 = vrot.lane.b32.xlu0 %v2371_v21, %s2063_s11 }
 0xc37   :  { %1621 = vrot.lane.b32.xlu1 %v1245_v47, %s2064_s12 }
 0xc39   :  { %1623 = vrot.lane.b32.xlu0 %v1246_v48, %s2064_s12 }
 0xc3b   :  { %1627 = vrot.lane.b32.xlu1 %v1429_v1, %s2065_s13 }
 0xc3d   :  { %1629 = vrot.lane.b32.xlu0 %v1430_v15, %s2065_s13 }
 0xca5   :  { %v1439_v12 = vpop.permute.xlu1 %1438 }
 0xca6   :  { %v1442_v16 = vmul.f32 %v1439_v12, %v2205_v30 }
 0xca7   :  { %v1434_v2 = vpop.permute.xlu0 %1433 }
 0xca8   :  { %v1441_v3 = vmul.f32 %v1434_v2, %v2205_v30  ;;  %v1444_v0 = vadd.f32 %v1442_v16, %v2208_v31 }
 0xcaa   :  { %v1443_v4 = vadd.f32 %v1441_v3, %v2208_v31  ;;  %v1446_v7 = vmax.f32 %v1444_v0, 0.0  ;;  %v1658_v24 = vpop.permute.xlu1 %1657 }
 0xcac   :  { %v1445_v6 = vmax.f32 %v1443_v4, 0.0 }
 0xcae   :  { %1989 = vmatprep.mubr.msk.f32.mxu0 %vm181_vm0, %v1445_v6  ;;  %v1616_v27 = vpop.permute.xlu1 %1615 }
 0xcaf   :  { %1990 = vmatmul.mubr.msk.f32.vlgmr.msra.gmra.mxu0 %vm181_vm0, %v1446_v7 }
 0xcb2   :  { %v1622_v32 = vpop.permute.xlu1 %1621 }
 0xcb3   :  { %v1642_v38 = vsel %vm1641_vm1, %v1616_v27, %v1622_v32 }
 0xcb6   :  { %v1628_v34 = vpop.permute.xlu1 %1627 }
 0xcb7   :  { %v1645_v39 = vsel %vm1644_vm3, %v1642_v38, %v1628_v34 }
 0xd6f   :  { %v1991_v13 = vpop.f32.mrf.mxu0 }
 0xd70   :  { %v1525_v14 = vadd.f32 %v1991_v13, %v2268_v46 }
 0xd71   :  { %v1519_v17 = vpop.f32.mrf.mxu0 }
 0xd72   :  { %v1520_v18 = vadd.f32 %v1519_v17, %v2268_v46  ;;  %v1529_v19 = vadd.f32 %v1980_v11, %v1525_v14  ;;  %v1653_v46 = vpop.permute.xlu0 %1652 }
 0xd74   :  { %v1528_v26 = vadd.f32 %v1520_v18, %v1420_v63 }
 0xd76   :  { %2056 = vtanh.f32 %v1528_v26  ;;  %v1618_v25 = vpop.permute.xlu0 %1617 }
 0xd77   :  { %2058 = vtanh.f32 %v1529_v19 }
 0xd7a   :  { %v1624_v29 = vpop.permute.xlu0 %1623 }
 0xd7b   :  { %v1643_v35 = vsel %vm1641_vm1, %v1618_v25, %v1624_v29 }
 0xd7e   :  { %v1630_v33 = vpop.permute.xlu0 %1629 }
 0xd7f   :  { %v1646_v36 = vsel %vm1644_vm3, %v1643_v35, %v1630_v33 }
 0xd83   :  { %v2057_v30 = vpop.eup %2056 }
 0xd84   :  { %v2059_v20 = vpop.eup %2058  ;;  %2000 = vmatprep.mubr.msk.f32.mxu1 %vm181_vm0, %v2057_v30 }
 0xd85   :  { %2001 = vmatmul.mubr.msk.f32.vlgmr.msra.gmra.mxu1 %vm181_vm0, %v2059_v20 }
 0xe45   :  { %v2002_v31 = vpop.f32.mrf.mxu1 }
 0xe46   :  { %v1614_v21 = vadd.f32 %v2002_v31, %v2368_v28 }
 0xe47   :  { %v1604_v22 = vpop.f32.mrf.mxu1 }
 0xe48   :  { %v1613_v23 = vadd.f32 %v1604_v22, %v2368_v28  ;;  %1637 = vrot.lane.b32.xlu0 %v1614_v21, %s2066_s0 }
 0xe4a   :  { %1635 = vrot.lane.b32.xlu1 %v1613_v23, %s2066_s0 }
 0xeba   :  { %v1638_v37 = vpop.permute.xlu0 %1637 }
 0xebb   :  { %v1649_v28 = vsel %vm1647_vm2, %v1646_v36, %v1638_v37 }
 0xebc   :  { %v1661_v40 = vadd.f32 %v1658_v24, %v1649_v28  ;;  %v1636_v41 = vpop.permute.xlu1 %1635 }
 0xebd   :  { %v1648_v42 = vsel %vm1647_vm2, %v1645_v39, %v1636_v41 }
 0xebe   :  { %1664 = vst.msk [vmem:[%s2463_s3 + $0x8] sm:$0xff] %vm1662_vm4, %v1661_v40  ;;  %v1660_v43 = vadd.f32 %v1653_v46, %v1648_v42 }
 0xec0   :  { %1663 = vst.msk [vmem:[%s2463_s3] sm:$0xff] %vm1662_vm4, %v1660_v43 }

</bundles_post_ra>
